<compile_context>
chip_gen: v6e
topology: v6e:2x2x1
jax: 0.10.0
libtpu: 0.0.40
codegen_flags: <defaults>
</compile_context>

<pallas_src>
import functools

import jax
import jax.numpy as jnp
from jax.experimental import pallas as pl
from jax.experimental.pallas import tpu as pltpu


# --------------------------------------------------------------------------
# small helpers
# --------------------------------------------------------------------------
def _round_up(x, m):
    return (x + m - 1) // m * m


def _pad_last(x, d):
    if x.shape[-1] == d:
        return x
    return jnp.concatenate(
        [x, jnp.zeros(x.shape[:-1] + (d - x.shape[-1],), x.dtype)], axis=-1)


def _lstm_layer(x, h, c, w, b, hid_dim):
    """Fused-gate LSTM cell: single MXU matmul on concat([x, h])."""
    xh = jnp.concatenate([x, h], axis=-1)                       # (B, D_IN + H)
    gates = jnp.dot(xh, w, preferred_element_type=jnp.float32) + b
    H = hid_dim
    i = jax.nn.sigmoid(gates[:, 0:H])
    f = jax.nn.sigmoid(gates[:, H:2 * H])
    g = jnp.tanh(gates[:, 2 * H:3 * H])
    o = jax.nn.sigmoid(gates[:, 3 * H:4 * H])
    c_new = f * c + i * g
    h_new = o * jnp.tanh(c_new)
    return h_new, c_new


# --------------------------------------------------------------------------
# Fused encoder kernel: grid over source timesteps, h/c carried in outputs
# --------------------------------------------------------------------------
def _encoder_kernel(emb_ref, lens_ref, w_ref, b_ref, h_ref, c_ref,
                    *, hid_dim, n_layers, d_in):
    t = pl.program_id(0)

    @pl.when(t == 0)
    def _():
        h_ref[...] = jnp.zeros_like(h_ref)
        c_ref[...] = jnp.zeros_like(c_ref)

    valid = lens_ref[...] > t                 # (B, 1) — pack_padded semantics
    x = emb_ref[0]                            # (B, d_in)
    for l in range(n_layers):
        h_prev = h_ref[l]
        c_prev = c_ref[l]
        h_new, c_new = _lstm_layer(_pad_last(x, d_in), h_prev, c_prev,
                                   w_ref[l], b_ref[l], hid_dim)
        h_new = jnp.where(valid, h_new, h_prev)   # freeze finished sequences
        c_new = jnp.where(valid, c_new, c_prev)
        h_ref[l] = h_new
        c_ref[l] = c_new
        x = h_new


def encoder_forward(enc_emb, enc_w, enc_b, src, src_lengths,
                    *, hid_dim, n_layers, d_in):
    S, B = src.shape
    embedded = jnp.take(enc_emb, src, axis=0)            # (S, B, d_in)
    lens = src_lengths.reshape(B, 1).astype(jnp.int32)   # (B, 1)
    kernel = functools.partial(_encoder_kernel, hid_dim=hid_dim,
                               n_layers=n_layers, d_in=d_in)
    h, c = pl.pallas_call(
        kernel,
        grid=(S,),
        out_shape=(jax.ShapeDtypeStruct((n_layers, B, hid_dim), jnp.float32),
                   jax.ShapeDtypeStruct((n_layers, B, hid_dim), jnp.float32)),
        in_specs=[
            pl.BlockSpec((1, B, d_in), lambda t: (t, 0, 0)),       # time slice
            pl.BlockSpec((B, 1), lambda t: (0, 0)),                # resident
            pl.BlockSpec(enc_w.shape, lambda t: (0, 0, 0)),        # resident
            pl.BlockSpec(enc_b.shape, lambda t: (0, 0, 0)),        # resident
        ],
        out_specs=(pl.BlockSpec((n_layers, B, hid_dim), lambda t: (0, 0, 0)),
                   pl.BlockSpec((n_layers, B, hid_dim), lambda t: (0, 0, 0))),
        compiler_params=pltpu.CompilerParams(
            dimension_semantics=("arbitrary",)),
    )(embedded, lens, enc_w, enc_b)
    return h, c


# --------------------------------------------------------------------------
# Fused greedy decoder kernel: grid over target timesteps, argmax + embedding
# feedback stay on-chip, h/c/x carried in VMEM scratch
# --------------------------------------------------------------------------
def _decoder_kernel(h0_ref, c0_ref, x0_ref, w_ref, b_ref, wfc_ref, bfc_ref,
                    demb_ref, out_ref, h_scr, c_scr, x_scr,
                    *, hid_dim, n_layers, d_in):
    t = pl.program_id(0)

    @pl.when(t == 0)
    def _():
        h_scr[...] = h0_ref[...]
        c_scr[...] = c0_ref[...]
        x_scr[...] = x0_ref[...]

    x = x_scr[...]
    for l in range(n_layers):
        h_new, c_new = _lstm_layer(_pad_last(x, d_in), h_scr[l], c_scr[l],
                                   w_ref[l], b_ref[l], hid_dim)
        h_scr[l] = h_new
        c_scr[l] = c_new
        x = h_new

    # lane-dense (B, Vpad) logits
    logits = (jnp.dot(x, wfc_ref[...], preferred_element_type=jnp.float32)
              + bfc_ref[...])
    out_ref[0] = logits

    # greedy feedback kept on-chip: first-max argmax (torch.argmax semantics)
    # -> one-hot -> embedding lookup as a tiny MXU matmul against the
    # VMEM-resident padded decoder embedding table.
    vpad = logits.shape[-1]
    col = jax.lax.broadcasted_iota(jnp.int32, logits.shape, 1)
    mx = jnp.max(logits, axis=-1, keepdims=True)
    idx = jnp.min(jnp.where(logits == mx, col, vpad), axis=-1, keepdims=True)
    onehot = (col == idx).astype(jnp.float32)                  # (B, Vpad)
    x_scr[...] = jnp.dot(onehot, demb_ref[...],
                         preferred_element_type=jnp.float32)   # (B, d_in)


def decoder_forward(h, c, x0, dec_w, dec_b, w_fc, b_fc, dec_emb, trg_len,
                    *, hid_dim, n_layers, d_in):
    n_l, B, H = h.shape
    Vpad = w_fc.shape[1]
    T = trg_len - 1
    kernel = functools.partial(_decoder_kernel, hid_dim=hid_dim,
                               n_layers=n_layers, d_in=d_in)
    logits = pl.pallas_call(
        kernel,
        grid=(T,),
        out_shape=jax.ShapeDtypeStruct((T, B, Vpad), jnp.float32),
        in_specs=[
            pl.BlockSpec((n_l, B, H), lambda t: (0, 0, 0)),        # h0
            pl.BlockSpec((n_l, B, H), lambda t: (0, 0, 0)),        # c0
            pl.BlockSpec((B, d_in), lambda t: (0, 0)),             # x0
            pl.BlockSpec(dec_w.shape, lambda t: (0, 0, 0)),        # LSTM W
            pl.BlockSpec(dec_b.shape, lambda t: (0, 0, 0)),        # LSTM b
            pl.BlockSpec((H, Vpad), lambda t: (0, 0)),             # fc W
            pl.BlockSpec((1, Vpad), lambda t: (0, 0)),             # fc b
            pl.BlockSpec(dec_emb.shape, lambda t: (0, 0)),         # emb table
        ],
        out_specs=pl.BlockSpec((1, B, Vpad), lambda t: (t, 0, 0)),
        scratch_shapes=[
            pltpu.VMEM((n_l, B, H), jnp.float32),   # h state
            pltpu.VMEM((n_l, B, H), jnp.float32),   # c state
            pltpu.VMEM((B, d_in), jnp.float32),     # fed-back embedding
        ],
        compiler_params=pltpu.CompilerParams(
            dimension_semantics=("arbitrary",)),
    )(h, c, x0, dec_w, dec_b, w_fc, b_fc, dec_emb)
    return logits


# --------------------------------------------------------------------------
# Full forward (matches PyTorch Seq2Seq.forward with teacher_forcing_ratio=0)
# --------------------------------------------------------------------------
def seq2seq_forward(enc_params, dec_params, src, src_lengths, trg,
                    *, hid_dim, n_layers, trg_vocab):
    # TODO(synk): stochastic teacher forcing (random.random()) not implemented
    #             since the reference forward uses teacher_forcing_ratio=0.
    enc_emb, enc_w, enc_b = enc_params
    dec_emb, dec_w, dec_b, w_fc, b_fc = dec_params
    trg_len, B = trg.shape
    d_in = enc_emb.shape[1]

    h, c = encoder_forward(enc_emb, enc_w, enc_b, src, src_lengths,
                           hid_dim=hid_dim, n_layers=n_layers, d_in=d_in)
    x0 = jnp.take(dec_emb, trg[0], axis=0)              # (B, d_in)
    logits_pad = decoder_forward(h, c, x0, dec_w, dec_b, w_fc, b_fc, dec_emb,
                                 trg_len, hid_dim=hid_dim, n_layers=n_layers,
                                 d_in=d_in)             # (trg_len-1, B, Vpad)
    logits = logits_pad[:, :, :trg_vocab]
    # outputs[0] is never written in the PyTorch reference -> stays zero
    return jnp.concatenate(
        [jnp.zeros((1, B, trg_vocab), jnp.float32), logits], axis=0)


# --------------------------------------------------------------------------
# Deterministic parameter construction
# --------------------------------------------------------------------------
def init_lstm_params(key, in_dim, hid_dim, n_layers, scale=0.1):
    params = []
    for layer in range(n_layers):
        d = in_dim if layer == 0 else hid_dim
        key, k1, k2, k3 = jax.random.split(key, 4)
        w_ih = scale * jax.random.normal(k1, (d, 4 * hid_dim), jnp.float32)
        w_hh = scale * jax.random.normal(k2, (hid_dim, 4 * hid_dim), jnp.float32)
        b = scale * jax.random.normal(k3, (1, 4 * hid_dim), jnp.float32)
        params.append((w_ih, w_hh, b))
    return params, key


def pack_lstm_params(lstm_params, d_in, hid_dim):
    """Fuse (W_ih, W_hh) into one (d_in+H, 4H) matrix per layer and stack."""
    n_layers = len(lstm_params)
    W = jnp.zeros((n_layers, d_in + hid_dim, 4 * hid_dim), jnp.float32)
    b = jnp.zeros((n_layers, 1, 4 * hid_dim), jnp.float32)
    for l, (w_ih, w_hh, bias) in enumerate(lstm_params):
        W = W.at[l, :w_ih.shape[0], :].set(w_ih)
        W = W.at[l, d_in:d_in + hid_dim, :].set(w_hh)
        b = b.at[l].set(bias)
    return W, b


if __name__ == "__main__":
    SRC_VOCAB, TRG_VOCAB = 48, 32
    EMB_DIM, HID_DIM, N_LAYERS = 16, 32, 2
    BATCH, SRC_LEN, TRG_LEN = 8, 7, 6
    D_IN = max(EMB_DIM, HID_DIM)          # common layer-input width (padded)
    V_PAD = _round_up(TRG_VOCAB, 128)     # lane-dense logits

    key = jax.random.PRNGKey(0)

    # Encoder: embedding (padded to D_IN cols) + fused n-layer LSTM weights
    key, k_emb = jax.random.split(key)
    enc_emb = 0.1 * jax.random.normal(k_emb, (SRC_VOCAB, EMB_DIM), jnp.float32)
    enc_emb_p = jnp.pad(enc_emb, ((0, 0), (0, D_IN - EMB_DIM)))
    enc_lstm, key = init_lstm_params(key, EMB_DIM, HID_DIM, N_LAYERS)
    enc_w, enc_b = pack_lstm_params(enc_lstm, D_IN, HID_DIM)
    enc_params = (enc_emb_p, enc_w, enc_b)

    # Decoder: embedding padded to (V_PAD, D_IN), LSTM, fc padded to V_PAD
    key, k_emb2, k_w, k_b = jax.random.split(key, 4)
    dec_emb = 0.1 * jax.random.normal(k_emb2, (TRG_VOCAB, EMB_DIM), jnp.float32)
    dec_emb_p = jnp.pad(dec_emb, ((0, V_PAD - TRG_VOCAB), (0, D_IN - EMB_DIM)))
    dec_lstm, key = init_lstm_params(key, EMB_DIM, HID_DIM, N_LAYERS)
    dec_w, dec_b = pack_lstm_params(dec_lstm, D_IN, HID_DIM)
    w_fc = 0.1 * jax.random.normal(k_w, (HID_DIM, TRG_VOCAB), jnp.float32)
    b_fc = 0.1 * jax.random.normal(k_b, (1, TRG_VOCAB), jnp.float32)
    w_fc_p = jnp.pad(w_fc, ((0, 0), (0, V_PAD - TRG_VOCAB)))
    b_fc_p = jnp.pad(b_fc, ((0, 0), (0, V_PAD - TRG_VOCAB)),
                     constant_values=-1e30)   # padded cols never win argmax
    dec_params = (dec_emb_p, dec_w, dec_b, w_fc_p, b_fc_p)

    # Inputs (time-major, like the PyTorch tutorial)
    key, k_src, k_trg = jax.random.split(key, 3)
    src = jax.random.randint(k_src, (SRC_LEN, BATCH), 0, SRC_VOCAB, jnp.int32)
    trg = jax.random.randint(k_trg, (TRG_LEN, BATCH), 0, TRG_VOCAB, jnp.int32)
    src_lengths = jnp.array([7, 7, 6, 5, 5, 4, 3, 2], dtype=jnp.int32)

    fwd = jax.jit(functools.partial(seq2seq_forward, hid_dim=HID_DIM,
                                    n_layers=N_LAYERS, trg_vocab=TRG_VOCAB))
    out = fwd(enc_params, dec_params, src, src_lengths, trg)
    out = jax.block_until_ready(out)

    assert out.shape == (TRG_LEN, BATCH, TRG_VOCAB), out.shape
    assert out.dtype == jnp.float32
    assert bool(jnp.all(out[0] == 0.0))   # outputs[0] is never written (torch)
    assert bool(jnp.all(jnp.isfinite(out)))
    print("KERNEL_OK")
</pallas_src>

<mosaic_0001>
module attributes {stable_mosaic.version = 11 : i64} {
  func.func @_encoder_kernel(%arg0: i32, %arg1: memref<1x8x32xf32, #tpu.memory_space<vmem>>, %arg2: memref<8x1xi32, #tpu.memory_space<vmem>>, %arg3: memref<2x64x128xf32, #tpu.memory_space<vmem>>, %arg4: memref<2x1x128xf32, #tpu.memory_space<vmem>>, %arg5: memref<2x8x32xf32, #tpu.memory_space<vmem>>, %arg6: memref<2x8x32xf32, #tpu.memory_space<vmem>>) attributes {dimension_semantics = [#tpu.dimension_semantics<arbitrary>], iteration_bounds = array<i64: 7>, scalar_prefetch = 0 : i64, scratch_operands = 0 : i64, tpu.core_type = #tpu.core_type<tc>, window_params = [{transform_indices = @transform_0, window_bounds = array<i64: 1, 8, 32>}, {pipeline_mode = #tpu.pipeline_mode<synchronous>, transform_indices = @transform_1, window_bounds = array<i64: 8, 1>}, {pipeline_mode = #tpu.pipeline_mode<synchronous>, transform_indices = @transform_2, window_bounds = array<i64: 2, 64, 128>}, {pipeline_mode = #tpu.pipeline_mode<synchronous>, transform_indices = @transform_3, window_bounds = array<i64: 2, 1, 128>}, {pipeline_mode = #tpu.pipeline_mode<synchronous>, transform_indices = @transform_4, window_bounds = array<i64: 2, 8, 32>}, {pipeline_mode = #tpu.pipeline_mode<synchronous>, transform_indices = @transform_5, window_bounds = array<i64: 2, 8, 32>}]} {
    %c0_i32 = arith.constant 0 : i32
    %0 = arith.cmpi eq, %arg0, %c0_i32 : i32
    %1 = arith.extui %0 : i1 to i32
    %c0_i32_0 = arith.constant 0 : i32
    %2 = arith.cmpi ne, %1, %c0_i32_0 : i32
    scf.if %2 {
      %cst_47 = arith.constant 0.000000e+00 : f32
      %106 = vector.broadcast %cst_47 : f32 to vector<2x8x32xf32>
      %c0_48 = arith.constant 0 : index
      %c0_49 = arith.constant 0 : index
      %c0_50 = arith.constant 0 : index
      %107 = vector.load %arg5[%c0_48, %c0_49, %c0_50] : memref<2x8x32xf32, #tpu.memory_space<vmem>>, vector<2x8x32xf32>
      tpu.vector_store %arg5[%c0_48, %c0_49, %c0_50], %106 {strides = array<i32>} : memref<2x8x32xf32, #tpu.memory_space<vmem>>, vector<2x8x32xf32>,
      %cst_51 = arith.constant 0.000000e+00 : f32
      %108 = vector.broadcast %cst_51 : f32 to vector<2x8x32xf32>
      %c0_52 = arith.constant 0 : index
      %c0_53 = arith.constant 0 : index
      %c0_54 = arith.constant 0 : index
      %109 = vector.load %arg6[%c0_52, %c0_53, %c0_54] : memref<2x8x32xf32, #tpu.memory_space<vmem>>, vector<2x8x32xf32>
      tpu.vector_store %arg6[%c0_52, %c0_53, %c0_54], %108 {strides = array<i32>} : memref<2x8x32xf32, #tpu.memory_space<vmem>>, vector<2x8x32xf32>,
    } else {
    }
    %c0 = arith.constant 0 : index
    %c0_1 = arith.constant 0 : index
    %3 = vector.load %arg2[%c0, %c0_1] : memref<8x1xi32, #tpu.memory_space<vmem>>, vector<8x1xi32>
    %4 = vector.broadcast %arg0 : i32 to vector<8x1xi32>
    %5 = arith.cmpi sgt, %3, %4 : vector<8x1xi32>
    %c0_2 = arith.constant 0 : index
    %c0_3 = arith.constant 0 : index
    %c0_4 = arith.constant 0 : index
    %6 = vector.load %arg1[%c0_2, %c0_3, %c0_4] : memref<1x8x32xf32, #tpu.memory_space<vmem>>, vector<1x8x32xf32>
    %7 = vector.shape_cast %6 : vector<1x8x32xf32> to vector<8x32xf32>
    %c0_5 = arith.constant 0 : index
    %c0_6 = arith.constant 0 : index
    %c0_7 = arith.constant 0 : index
    %8 = vector.load %arg5[%c0_5, %c0_6, %c0_7] : memref<2x8x32xf32, #tpu.memory_space<vmem>>, vector<1x8x32xf32>
    %9 = vector.shape_cast %8 : vector<1x8x32xf32> to vector<8x32xf32>
    %c0_8 = arith.constant 0 : index
    %c0_9 = arith.constant 0 : index
    %c0_10 = arith.constant 0 : index
    %10 = vector.load %arg6[%c0_8, %c0_9, %c0_10] : memref<2x8x32xf32, #tpu.memory_space<vmem>>, vector<1x8x32xf32>
    %11 = vector.shape_cast %10 : vector<1x8x32xf32> to vector<8x32xf32>
    %c0_11 = arith.constant 0 : index
    %c0_12 = arith.constant 0 : index
    %c0_13 = arith.constant 0 : index
    %12 = vector.load %arg3[%c0_11, %c0_12, %c0_13] : memref<2x64x128xf32, #tpu.memory_space<vmem>>, vector<1x64x128xf32>
    %13 = vector.shape_cast %12 : vector<1x64x128xf32> to vector<64x128xf32>
    %c0_14 = arith.constant 0 : index
    %c0_15 = arith.constant 0 : index
    %c0_16 = arith.constant 0 : index
    %14 = vector.load %arg4[%c0_14, %c0_15, %c0_16] : memref<2x1x128xf32, #tpu.memory_space<vmem>>, vector<1x1x128xf32>
    %15 = vector.shape_cast %14 : vector<1x1x128xf32> to vector<1x128xf32>
    %16 = tpu.concatenate %7, %9 in 1 : vector<8x32xf32>, vector<8x32xf32> -> vector<8x64xf32>
    %cst = arith.constant dense<0.000000e+00> : vector<8x128xf32>
    %17 = tpu.matmul %16, %13, %cst {dimension_numbers = #tpu.dot_dimension_numbers<[1], [0], [0], [1], [0, 0, 1, 1], [], []>} : vector<8x64xf32>, vector<64x128xf32>, vector<8x128xf32> -> vector<8x128xf32>
    %18 = vector.broadcast %15 : vector<1x128xf32> to vector<8x128xf32>
    %19 = arith.addf %17, %18 : vector<8x128xf32>
    %20 = vector.extract_strided_slice %19 {offsets = [0, 0], sizes = [8, 32], strides = [1, 1]} : vector<8x128xf32> to vector<8x32xf32>
    %21 = arith.negf %20 : vector<8x32xf32>
    %22 = math.exp %21 : vector<8x32xf32>
    %cst_17 = arith.constant 1.000000e+00 : f32
    %23 = vector.broadcast %cst_17 : f32 to vector<8x32xf32>
    %24 = arith.addf %23, %22 : vector<8x32xf32>
    %25 = arith.divf %23, %24 : vector<8x32xf32>
    %26 = vector.extract_strided_slice %19 {offsets = [0, 32], sizes = [8, 32], strides = [1, 1]} : vector<8x128xf32> to vector<8x32xf32>
    %27 = arith.negf %26 : vector<8x32xf32>
    %28 = math.exp %27 : vector<8x32xf32>
    %cst_18 = arith.constant 1.000000e+00 : f32
    %29 = vector.broadcast %cst_18 : f32 to vector<8x32xf32>
    %30 = arith.addf %29, %28 : vector<8x32xf32>
    %31 = arith.divf %29, %30 : vector<8x32xf32>
    %32 = vector.extract_strided_slice %19 {offsets = [0, 64], sizes = [8, 32], strides = [1, 1]} : vector<8x128xf32> to vector<8x32xf32>
    %33 = math.tanh %32 : vector<8x32xf32>
    %34 = vector.extract_strided_slice %19 {offsets = [0, 96], sizes = [8, 32], strides = [1, 1]} : vector<8x128xf32> to vector<8x32xf32>
    %35 = arith.negf %34 : vector<8x32xf32>
    %36 = math.exp %35 : vector<8x32xf32>
    %cst_19 = arith.constant 1.000000e+00 : f32
    %37 = vector.broadcast %cst_19 : f32 to vector<8x32xf32>
    %38 = arith.addf %37, %36 : vector<8x32xf32>
    %39 = arith.divf %37, %38 : vector<8x32xf32>
    %40 = arith.mulf %31, %11 : vector<8x32xf32>
    %41 = arith.mulf %25, %33 : vector<8x32xf32>
    %42 = arith.addf %40, %41 : vector<8x32xf32>
    %43 = math.tanh %42 : vector<8x32xf32>
    %44 = arith.mulf %39, %43 : vector<8x32xf32>
    %45 = vector.shape_cast %5 : vector<8x1xi1> to vector<8x1xi1>
    %46 = vector.broadcast %45 : vector<8x1xi1> to vector<8x32xi1>
    %47 = arith.select %46, %44, %9 : vector<8x32xi1>, vector<8x32xf32>
    %48 = vector.shape_cast %5 : vector<8x1xi1> to vector<8x1xi1>
    %49 = vector.broadcast %48 : vector<8x1xi1> to vector<8x32xi1>
    %50 = arith.select %49, %42, %11 : vector<8x32xi1>, vector<8x32xf32>
    %c0_20 = arith.constant 0 : index
    %c0_21 = arith.constant 0 : index
    %c0_22 = arith.constant 0 : index
    %51 = vector.load %arg5[%c0_20, %c0_21, %c0_22] : memref<2x8x32xf32, #tpu.memory_space<vmem>>, vector<1x8x32xf32>
    %52 = vector.shape_cast %51 : vector<1x8x32xf32> to vector<8x32xf32>
    %53 = vector.shape_cast %47 : vector<8x32xf32> to vector<1x8x32xf32>
    tpu.vector_store %arg5[%c0_20, %c0_21, %c0_22], %53 {strides = array<i32>} : memref<2x8x32xf32, #tpu.memory_space<vmem>>, vector<1x8x32xf32>,
    %c0_23 = arith.constant 0 : index
    %c0_24 = arith.constant 0 : index
    %c0_25 = arith.constant 0 : index
    %54 = vector.load %arg6[%c0_23, %c0_24, %c0_25] : memref<2x8x32xf32, #tpu.memory_space<vmem>>, vector<1x8x32xf32>
    %55 = vector.shape_cast %54 : vector<1x8x32xf32> to vector<8x32xf32>
    %56 = vector.shape_cast %50 : vector<8x32xf32> to vector<1x8x32xf32>
    tpu.vector_store %arg6[%c0_23, %c0_24, %c0_25], %56 {strides = array<i32>} : memref<2x8x32xf32, #tpu.memory_space<vmem>>, vector<1x8x32xf32>,
    %c1 = arith.constant 1 : index
    %c0_26 = arith.constant 0 : index
    %c0_27 = arith.constant 0 : index
    %57 = vector.load %arg5[%c1, %c0_26, %c0_27] : memref<2x8x32xf32, #tpu.memory_space<vmem>>, vector<1x8x32xf32>
    %58 = vector.shape_cast %57 : vector<1x8x32xf32> to vector<8x32xf32>
    %c1_28 = arith.constant 1 : index
    %c0_29 = arith.constant 0 : index
    %c0_30 = arith.constant 0 : index
    %59 = vector.load %arg6[%c1_28, %c0_29, %c0_30] : memref<2x8x32xf32, #tpu.memory_space<vmem>>, vector<1x8x32xf32>
    %60 = vector.shape_cast %59 : vector<1x8x32xf32> to vector<8x32xf32>
    %c1_31 = arith.constant 1 : index
    %c0_32 = arith.constant 0 : index
    %c0_33 = arith.constant 0 : index
    %61 = vector.load %arg3[%c1_31, %c0_32, %c0_33] : memref<2x64x128xf32, #tpu.memory_space<vmem>>, vector<1x64x128xf32>
    %62 = vector.shape_cast %61 : vector<1x64x128xf32> to vector<64x128xf32>
    %c1_34 = arith.constant 1 : index
    %c0_35 = arith.constant 0 : index
    %c0_36 = arith.constant 0 : index
    %63 = vector.load %arg4[%c1_34, %c0_35, %c0_36] : memref<2x1x128xf32, #tpu.memory_space<vmem>>, vector<1x1x128xf32>
    %64 = vector.shape_cast %63 : vector<1x1x128xf32> to vector<1x128xf32>
    %65 = tpu.concatenate %47, %58 in 1 : vector<8x32xf32>, vector<8x32xf32> -> vector<8x64xf32>
    %cst_37 = arith.constant dense<0.000000e+00> : vector<8x128xf32>
    %66 = tpu.matmul %65, %62, %cst_37 {dimension_numbers = #tpu.dot_dimension_numbers<[1], [0], [0], [1], [0, 0, 1, 1], [], []>} : vector<8x64xf32>, vector<64x128xf32>, vector<8x128xf32> -> vector<8x128xf32>
    %67 = vector.broadcast %64 : vector<1x128xf32> to vector<8x128xf32>
    %68 = arith.addf %66, %67 : vector<8x128xf32>
    %69 = vector.extract_strided_slice %68 {offsets = [0, 0], sizes = [8, 32], strides = [1, 1]} : vector<8x128xf32> to vector<8x32xf32>
    %70 = arith.negf %69 : vector<8x32xf32>
    %71 = math.exp %70 : vector<8x32xf32>
    %cst_38 = arith.constant 1.000000e+00 : f32
    %72 = vector.broadcast %cst_38 : f32 to vector<8x32xf32>
    %73 = arith.addf %72, %71 : vector<8x32xf32>
    %74 = arith.divf %72, %73 : vector<8x32xf32>
    %75 = vector.extract_strided_slice %68 {offsets = [0, 32], sizes = [8, 32], strides = [1, 1]} : vector<8x128xf32> to vector<8x32xf32>
    %76 = arith.negf %75 : vector<8x32xf32>
    %77 = math.exp %76 : vector<8x32xf32>
    %cst_39 = arith.constant 1.000000e+00 : f32
    %78 = vector.broadcast %cst_39 : f32 to vector<8x32xf32>
    %79 = arith.addf %78, %77 : vector<8x32xf32>
    %80 = arith.divf %78, %79 : vector<8x32xf32>
    %81 = vector.extract_strided_slice %68 {offsets = [0, 64], sizes = [8, 32], strides = [1, 1]} : vector<8x128xf32> to vector<8x32xf32>
    %82 = math.tanh %81 : vector<8x32xf32>
    %83 = vector.extract_strided_slice %68 {offsets = [0, 96], sizes = [8, 32], strides = [1, 1]} : vector<8x128xf32> to vector<8x32xf32>
    %84 = arith.negf %83 : vector<8x32xf32>
    %85 = math.exp %84 : vector<8x32xf32>
    %cst_40 = arith.constant 1.000000e+00 : f32
    %86 = vector.broadcast %cst_40 : f32 to vector<8x32xf32>
    %87 = arith.addf %86, %85 : vector<8x32xf32>
    %88 = arith.divf %86, %87 : vector<8x32xf32>
    %89 = arith.mulf %80, %60 : vector<8x32xf32>
    %90 = arith.mulf %74, %82 : vector<8x32xf32>
    %91 = arith.addf %89, %90 : vector<8x32xf32>
    %92 = math.tanh %91 : vector<8x32xf32>
    %93 = arith.mulf %88, %92 : vector<8x32xf32>
    %94 = vector.shape_cast %5 : vector<8x1xi1> to vector<8x1xi1>
    %95 = vector.broadcast %94 : vector<8x1xi1> to vector<8x32xi1>
    %96 = arith.select %95, %93, %58 : vector<8x32xi1>, vector<8x32xf32>
    %97 = vector.shape_cast %5 : vector<8x1xi1> to vector<8x1xi1>
    %98 = vector.broadcast %97 : vector<8x1xi1> to vector<8x32xi1>
    %99 = arith.select %98, %91, %60 : vector<8x32xi1>, vector<8x32xf32>
    %c1_41 = arith.constant 1 : index
    %c0_42 = arith.constant 0 : index
    %c0_43 = arith.constant 0 : index
    %100 = vector.load %arg5[%c1_41, %c0_42, %c0_43] : memref<2x8x32xf32, #tpu.memory_space<vmem>>, vector<1x8x32xf32>
    %101 = vector.shape_cast %100 : vector<1x8x32xf32> to vector<8x32xf32>
    %102 = vector.shape_cast %96 : vector<8x32xf32> to vector<1x8x32xf32>
    tpu.vector_store %arg5[%c1_41, %c0_42, %c0_43], %102 {strides = array<i32>} : memref<2x8x32xf32, #tpu.memory_space<vmem>>, vector<1x8x32xf32>,
    %c1_44 = arith.constant 1 : index
    %c0_45 = arith.constant 0 : index
    %c0_46 = arith.constant 0 : index
    %103 = vector.load %arg6[%c1_44, %c0_45, %c0_46] : memref<2x8x32xf32, #tpu.memory_space<vmem>>, vector<1x8x32xf32>
    %104 = vector.shape_cast %103 : vector<1x8x32xf32> to vector<8x32xf32>
    %105 = vector.shape_cast %99 : vector<8x32xf32> to vector<1x8x32xf32>
    tpu.vector_store %arg6[%c1_44, %c0_45, %c0_46], %105 {strides = array<i32>} : memref<2x8x32xf32, #tpu.memory_space<vmem>>, vector<1x8x32xf32>,
    return
  }
  func.func @transform_0(%arg0: i32) -> (i32, i32, i32) {
    %c0_i32 = arith.constant 0 : i32
    %c0_i32_0 = arith.constant 0 : i32
    %c0_i32_1 = arith.constant 0 : i32
    return %arg0, %c0_i32, %c0_i32_0 : i32, i32, i32
  }
  func.func @transform_1(%arg0: i32) -> (i32, i32) {
    %c0_i32 = arith.constant 0 : i32
    %c0_i32_0 = arith.constant 0 : i32
    %c0_i32_1 = arith.constant 0 : i32
    return %c0_i32, %c0_i32_0 : i32, i32
  }
  func.func @transform_2(%arg0: i32) -> (i32, i32, i32) {
    %c0_i32 = arith.constant 0 : i32
    %c0_i32_0 = arith.constant 0 : i32
    %c0_i32_1 = arith.constant 0 : i32
    %c0_i32_2 = arith.constant 0 : i32
    return %c0_i32, %c0_i32_0, %c0_i32_1 : i32, i32, i32
  }
  func.func @transform_3(%arg0: i32) -> (i32, i32, i32) {
    %c0_i32 = arith.constant 0 : i32
    %c0_i32_0 = arith.constant 0 : i32
    %c0_i32_1 = arith.constant 0 : i32
    %c0_i32_2 = arith.constant 0 : i32
    return %c0_i32, %c0_i32_0, %c0_i32_1 : i32, i32, i32
  }
  func.func @transform_4(%arg0: i32) -> (i32, i32, i32) {
    %c0_i32 = arith.constant 0 : i32
    %c0_i32_0 = arith.constant 0 : i32
    %c0_i32_1 = arith.constant 0 : i32
    %c0_i32_2 = arith.constant 0 : i32
    return %c0_i32, %c0_i32_0, %c0_i32_1 : i32, i32, i32
  }
  func.func @transform_5(%arg0: i32) -> (i32, i32, i32) {
    %c0_i32 = arith.constant 0 : i32
    %c0_i32_0 = arith.constant 0 : i32
    %c0_i32_1 = arith.constant 0 : i32
    %c0_i32_2 = arith.constant 0 : i32
    return %c0_i32, %c0_i32_0, %c0_i32_1 : i32, i32, i32
  }
}

module attributes {stable_mosaic.version = 11 : i64} {
  func.func @_decoder_kernel(%arg0: i32, %arg1: memref<2x8x32xf32, #tpu.memory_space<vmem>>, %arg2: memref<2x8x32xf32, #tpu.memory_space<vmem>>, %arg3: memref<8x32xf32, #tpu.memory_space<vmem>>, %arg4: memref<2x64x128xf32, #tpu.memory_space<vmem>>, %arg5: memref<2x1x128xf32, #tpu.memory_space<vmem>>, %arg6: memref<32x128xf32, #tpu.memory_space<vmem>>, %arg7: memref<1x128xf32, #tpu.memory_space<vmem>>, %arg8: memref<128x32xf32, #tpu.memory_space<vmem>>, %arg9: memref<1x8x128xf32, #tpu.memory_space<vmem>>, %arg10: memref<2x8x32xf32, #tpu.memory_space<vmem>>, %arg11: memref<2x8x32xf32, #tpu.memory_space<vmem>>, %arg12: memref<8x32xf32, #tpu.memory_space<vmem>>) attributes {dimension_semantics = [#tpu.dimension_semantics<arbitrary>], iteration_bounds = array<i64: 5>, scalar_prefetch = 0 : i64, scratch_operands = 3 : i64, tpu.core_type = #tpu.core_type<tc>, window_params = [{pipeline_mode = #tpu.pipeline_mode<synchronous>, transform_indices = @transform_0, window_bounds = array<i64: 2, 8, 32>}, {pipeline_mode = #tpu.pipeline_mode<synchronous>, transform_indices = @transform_1, window_bounds = array<i64: 2, 8, 32>}, {pipeline_mode = #tpu.pipeline_mode<synchronous>, transform_indices = @transform_2, window_bounds = array<i64: 8, 32>}, {pipeline_mode = #tpu.pipeline_mode<synchronous>, transform_indices = @transform_3, window_bounds = array<i64: 2, 64, 128>}, {pipeline_mode = #tpu.pipeline_mode<synchronous>, transform_indices = @transform_4, window_bounds = array<i64: 2, 1, 128>}, {pipeline_mode = #tpu.pipeline_mode<synchronous>, transform_indices = @transform_5, window_bounds = array<i64: 32, 128>}, {pipeline_mode = #tpu.pipeline_mode<synchronous>, transform_indices = @transform_6, window_bounds = array<i64: 1, 128>}, {pipeline_mode = #tpu.pipeline_mode<synchronous>, transform_indices = @transform_7, window_bounds = array<i64: 128, 32>}, {transform_indices = @transform_8, window_bounds = array<i64: 1, 8, 128>}]} {
    %c0_i32 = arith.constant 0 : i32
    %0 = arith.cmpi eq, %arg0, %c0_i32 : i32
    %1 = arith.extui %0 : i1 to i32
    %c0_i32_0 = arith.constant 0 : i32
    %2 = arith.cmpi ne, %1, %c0_i32_0 : i32
    scf.if %2 {
      %c0_59 = arith.constant 0 : index
      %c0_60 = arith.constant 0 : index
      %c0_61 = arith.constant 0 : index
      %114 = vector.load %arg1[%c0_59, %c0_60, %c0_61] : memref<2x8x32xf32, #tpu.memory_space<vmem>>, vector<2x8x32xf32>
      %c0_62 = arith.constant 0 : index
      %c0_63 = arith.constant 0 : index
      %c0_64 = arith.constant 0 : index
      %115 = vector.load %arg10[%c0_62, %c0_63, %c0_64] : memref<2x8x32xf32, #tpu.memory_space<vmem>>, vector<2x8x32xf32>
      tpu.vector_store %arg10[%c0_62, %c0_63, %c0_64], %114 {strides = array<i32>} : memref<2x8x32xf32, #tpu.memory_space<vmem>>, vector<2x8x32xf32>,
      %c0_65 = arith.constant 0 : index
      %c0_66 = arith.constant 0 : index
      %c0_67 = arith.constant 0 : index
      %116 = vector.load %arg2[%c0_65, %c0_66, %c0_67] : memref<2x8x32xf32, #tpu.memory_space<vmem>>, vector<2x8x32xf32>
      %c0_68 = arith.constant 0 : index
      %c0_69 = arith.constant 0 : index
      %c0_70 = arith.constant 0 : index
      %117 = vector.load %arg11[%c0_68, %c0_69, %c0_70] : memref<2x8x32xf32, #tpu.memory_space<vmem>>, vector<2x8x32xf32>
      tpu.vector_store %arg11[%c0_68, %c0_69, %c0_70], %116 {strides = array<i32>} : memref<2x8x32xf32, #tpu.memory_space<vmem>>, vector<2x8x32xf32>,
      %c0_71 = arith.constant 0 : index
      %c0_72 = arith.constant 0 : index
      %118 = vector.load %arg3[%c0_71, %c0_72] : memref<8x32xf32, #tpu.memory_space<vmem>>, vector<8x32xf32>
      %c0_73 = arith.constant 0 : index
      %c0_74 = arith.constant 0 : index
      %119 = vector.load %arg12[%c0_73, %c0_74] : memref<8x32xf32, #tpu.memory_space<vmem>>, vector<8x32xf32>
      tpu.vector_store %arg12[%c0_73, %c0_74], %118 {strides = array<i32>} : memref<8x32xf32, #tpu.memory_space<vmem>>, vector<8x32xf32>,
    } else {
    }
    %c0 = arith.constant 0 : index
    %c0_1 = arith.constant 0 : index
    %3 = vector.load %arg12[%c0, %c0_1] : memref<8x32xf32, #tpu.memory_space<vmem>>, vector<8x32xf32>
    %c0_2 = arith.constant 0 : index
    %c0_3 = arith.constant 0 : index
    %c0_4 = arith.constant 0 : index
    %4 = vector.load %arg10[%c0_2, %c0_3, %c0_4] : memref<2x8x32xf32, #tpu.memory_space<vmem>>, vector<1x8x32xf32>
    %5 = vector.shape_cast %4 : vector<1x8x32xf32> to vector<8x32xf32>
    %c0_5 = arith.constant 0 : index
    %c0_6 = arith.constant 0 : index
    %c0_7 = arith.constant 0 : index
    %6 = vector.load %arg11[%c0_5, %c0_6, %c0_7] : memref<2x8x32xf32, #tpu.memory_space<vmem>>, vector<1x8x32xf32>
    %7 = vector.shape_cast %6 : vector<1x8x32xf32> to vector<8x32xf32>
    %c0_8 = arith.constant 0 : index
    %c0_9 = arith.constant 0 : index
    %c0_10 = arith.constant 0 : index
    %8 = vector.load %arg4[%c0_8, %c0_9, %c0_10] : memref<2x64x128xf32, #tpu.memory_space<vmem>>, vector<1x64x128xf32>
    %9 = vector.shape_cast %8 : vector<1x64x128xf32> to vector<64x128xf32>
    %c0_11 = arith.constant 0 : index
    %c0_12 = arith.constant 0 : index
    %c0_13 = arith.constant 0 : index
    %10 = vector.load %arg5[%c0_11, %c0_12, %c0_13] : memref<2x1x128xf32, #tpu.memory_space<vmem>>, vector<1x1x128xf32>
    %11 = vector.shape_cast %10 : vector<1x1x128xf32> to vector<1x128xf32>
    %12 = tpu.concatenate %3, %5 in 1 : vector<8x32xf32>, vector<8x32xf32> -> vector<8x64xf32>
    %cst = arith.constant dense<0.000000e+00> : vector<8x128xf32>
    %13 = tpu.matmul %12, %9, %cst {dimension_numbers = #tpu.dot_dimension_numbers<[1], [0], [0], [1], [0, 0, 1, 1], [], []>} : vector<8x64xf32>, vector<64x128xf32>, vector<8x128xf32> -> vector<8x128xf32>
    %14 = vector.broadcast %11 : vector<1x128xf32> to vector<8x128xf32>
    %15 = arith.addf %13, %14 : vector<8x128xf32>
    %16 = vector.extract_strided_slice %15 {offsets = [0, 0], sizes = [8, 32], strides = [1, 1]} : vector<8x128xf32> to vector<8x32xf32>
    %17 = arith.negf %16 : vector<8x32xf32>
    %18 = math.exp %17 : vector<8x32xf32>
    %cst_14 = arith.constant 1.000000e+00 : f32
    %19 = vector.broadcast %cst_14 : f32 to vector<8x32xf32>
    %20 = arith.addf %19, %18 : vector<8x32xf32>
    %21 = arith.divf %19, %20 : vector<8x32xf32>
    %22 = vector.extract_strided_slice %15 {offsets = [0, 32], sizes = [8, 32], strides = [1, 1]} : vector<8x128xf32> to vector<8x32xf32>
    %23 = arith.negf %22 : vector<8x32xf32>
    %24 = math.exp %23 : vector<8x32xf32>
    %cst_15 = arith.constant 1.000000e+00 : f32
    %25 = vector.broadcast %cst_15 : f32 to vector<8x32xf32>
    %26 = arith.addf %25, %24 : vector<8x32xf32>
    %27 = arith.divf %25, %26 : vector<8x32xf32>
    %28 = vector.extract_strided_slice %15 {offsets = [0, 64], sizes = [8, 32], strides = [1, 1]} : vector<8x128xf32> to vector<8x32xf32>
    %29 = math.tanh %28 : vector<8x32xf32>
    %30 = vector.extract_strided_slice %15 {offsets = [0, 96], sizes = [8, 32], strides = [1, 1]} : vector<8x128xf32> to vector<8x32xf32>
    %31 = arith.negf %30 : vector<8x32xf32>
    %32 = math.exp %31 : vector<8x32xf32>
    %cst_16 = arith.constant 1.000000e+00 : f32
    %33 = vector.broadcast %cst_16 : f32 to vector<8x32xf32>
    %34 = arith.addf %33, %32 : vector<8x32xf32>
    %35 = arith.divf %33, %34 : vector<8x32xf32>
    %36 = arith.mulf %27, %7 : vector<8x32xf32>
    %37 = arith.mulf %21, %29 : vector<8x32xf32>
    %38 = arith.addf %36, %37 : vector<8x32xf32>
    %39 = math.tanh %38 : vector<8x32xf32>
    %40 = arith.mulf %35, %39 : vector<8x32xf32>
    %c0_17 = arith.constant 0 : index
    %c0_18 = arith.constant 0 : index
    %c0_19 = arith.constant 0 : index
    %41 = vector.load %arg10[%c0_17, %c0_18, %c0_19] : memref<2x8x32xf32, #tpu.memory_space<vmem>>, vector<1x8x32xf32>
    %42 = vector.shape_cast %41 : vector<1x8x32xf32> to vector<8x32xf32>
    %43 = vector.shape_cast %40 : vector<8x32xf32> to vector<1x8x32xf32>
    tpu.vector_store %arg10[%c0_17, %c0_18, %c0_19], %43 {strides = array<i32>} : memref<2x8x32xf32, #tpu.memory_space<vmem>>, vector<1x8x32xf32>,
    %c0_20 = arith.constant 0 : index
    %c0_21 = arith.constant 0 : index
    %c0_22 = arith.constant 0 : index
    %44 = vector.load %arg11[%c0_20, %c0_21, %c0_22] : memref<2x8x32xf32, #tpu.memory_space<vmem>>, vector<1x8x32xf32>
    %45 = vector.shape_cast %44 : vector<1x8x32xf32> to vector<8x32xf32>
    %46 = vector.shape_cast %38 : vector<8x32xf32> to vector<1x8x32xf32>
    tpu.vector_store %arg11[%c0_20, %c0_21, %c0_22], %46 {strides = array<i32>} : memref<2x8x32xf32, #tpu.memory_space<vmem>>, vector<1x8x32xf32>,
    %c1 = arith.constant 1 : index
    %c0_23 = arith.constant 0 : index
    %c0_24 = arith.constant 0 : index
    %47 = vector.load %arg10[%c1, %c0_23, %c0_24] : memref<2x8x32xf32, #tpu.memory_space<vmem>>, vector<1x8x32xf32>
    %48 = vector.shape_cast %47 : vector<1x8x32xf32> to vector<8x32xf32>
    %c1_25 = arith.constant 1 : index
    %c0_26 = arith.constant 0 : index
    %c0_27 = arith.constant 0 : index
    %49 = vector.load %arg11[%c1_25, %c0_26, %c0_27] : memref<2x8x32xf32, #tpu.memory_space<vmem>>, vector<1x8x32xf32>
    %50 = vector.shape_cast %49 : vector<1x8x32xf32> to vector<8x32xf32>
    %c1_28 = arith.constant 1 : index
    %c0_29 = arith.constant 0 : index
    %c0_30 = arith.constant 0 : index
    %51 = vector.load %arg4[%c1_28, %c0_29, %c0_30] : memref<2x64x128xf32, #tpu.memory_space<vmem>>, vector<1x64x128xf32>
    %52 = vector.shape_cast %51 : vector<1x64x128xf32> to vector<64x128xf32>
    %c1_31 = arith.constant 1 : index
    %c0_32 = arith.constant 0 : index
    %c0_33 = arith.constant 0 : index
    %53 = vector.load %arg5[%c1_31, %c0_32, %c0_33] : memref<2x1x128xf32, #tpu.memory_space<vmem>>, vector<1x1x128xf32>
    %54 = vector.shape_cast %53 : vector<1x1x128xf32> to vector<1x128xf32>
    %55 = tpu.concatenate %40, %48 in 1 : vector<8x32xf32>, vector<8x32xf32> -> vector<8x64xf32>
    %cst_34 = arith.constant dense<0.000000e+00> : vector<8x128xf32>
    %56 = tpu.matmul %55, %52, %cst_34 {dimension_numbers = #tpu.dot_dimension_numbers<[1], [0], [0], [1], [0, 0, 1, 1], [], []>} : vector<8x64xf32>, vector<64x128xf32>, vector<8x128xf32> -> vector<8x128xf32>
    %57 = vector.broadcast %54 : vector<1x128xf32> to vector<8x128xf32>
    %58 = arith.addf %56, %57 : vector<8x128xf32>
    %59 = vector.extract_strided_slice %58 {offsets = [0, 0], sizes = [8, 32], strides = [1, 1]} : vector<8x128xf32> to vector<8x32xf32>
    %60 = arith.negf %59 : vector<8x32xf32>
    %61 = math.exp %60 : vector<8x32xf32>
    %cst_35 = arith.constant 1.000000e+00 : f32
    %62 = vector.broadcast %cst_35 : f32 to vector<8x32xf32>
    %63 = arith.addf %62, %61 : vector<8x32xf32>
    %64 = arith.divf %62, %63 : vector<8x32xf32>
    %65 = vector.extract_strided_slice %58 {offsets = [0, 32], sizes = [8, 32], strides = [1, 1]} : vector<8x128xf32> to vector<8x32xf32>
    %66 = arith.negf %65 : vector<8x32xf32>
    %67 = math.exp %66 : vector<8x32xf32>
    %cst_36 = arith.constant 1.000000e+00 : f32
    %68 = vector.broadcast %cst_36 : f32 to vector<8x32xf32>
    %69 = arith.addf %68, %67 : vector<8x32xf32>
    %70 = arith.divf %68, %69 : vector<8x32xf32>
    %71 = vector.extract_strided_slice %58 {offsets = [0, 64], sizes = [8, 32], strides = [1, 1]} : vector<8x128xf32> to vector<8x32xf32>
    %72 = math.tanh %71 : vector<8x32xf32>
    %73 = vector.extract_strided_slice %58 {offsets = [0, 96], sizes = [8, 32], strides = [1, 1]} : vector<8x128xf32> to vector<8x32xf32>
    %74 = arith.negf %73 : vector<8x32xf32>
    %75 = math.exp %74 : vector<8x32xf32>
    %cst_37 = arith.constant 1.000000e+00 : f32
    %76 = vector.broadcast %cst_37 : f32 to vector<8x32xf32>
    %77 = arith.addf %76, %75 : vector<8x32xf32>
    %78 = arith.divf %76, %77 : vector<8x32xf32>
    %79 = arith.mulf %70, %50 : vector<8x32xf32>
    %80 = arith.mulf %64, %72 : vector<8x32xf32>
    %81 = arith.addf %79, %80 : vector<8x32xf32>
    %82 = math.tanh %81 : vector<8x32xf32>
    %83 = arith.mulf %78, %82 : vector<8x32xf32>
    %c1_38 = arith.constant 1 : index
    %c0_39 = arith.constant 0 : index
    %c0_40 = arith.constant 0 : index
    %84 = vector.load %arg10[%c1_38, %c0_39, %c0_40] : memref<2x8x32xf32, #tpu.memory_space<vmem>>, vector<1x8x32xf32>
    %85 = vector.shape_cast %84 : vector<1x8x32xf32> to vector<8x32xf32>
    %86 = vector.shape_cast %83 : vector<8x32xf32> to vector<1x8x32xf32>
    tpu.vector_store %arg10[%c1_38, %c0_39, %c0_40], %86 {strides = array<i32>} : memref<2x8x32xf32, #tpu.memory_space<vmem>>, vector<1x8x32xf32>,
    %c1_41 = arith.constant 1 : index
    %c0_42 = arith.constant 0 : index
    %c0_43 = arith.constant 0 : index
    %87 = vector.load %arg11[%c1_41, %c0_42, %c0_43] : memref<2x8x32xf32, #tpu.memory_space<vmem>>, vector<1x8x32xf32>
    %88 = vector.shape_cast %87 : vector<1x8x32xf32> to vector<8x32xf32>
    %89 = vector.shape_cast %81 : vector<8x32xf32> to vector<1x8x32xf32>
    tpu.vector_store %arg11[%c1_41, %c0_42, %c0_43], %89 {strides = array<i32>} : memref<2x8x32xf32, #tpu.memory_space<vmem>>, vector<1x8x32xf32>,
    %c0_44 = arith.constant 0 : index
    %c0_45 = arith.constant 0 : index
    %90 = vector.load %arg6[%c0_44, %c0_45] : memref<32x128xf32, #tpu.memory_space<vmem>>, vector<32x128xf32>
    %cst_46 = arith.constant dense<0.000000e+00> : vector<8x128xf32>
    %91 = tpu.matmul %83, %90, %cst_46 {dimension_numbers = #tpu.dot_dimension_numbers<[1], [0], [0], [1], [0, 0, 1, 1], [], []>} : vector<8x32xf32>, vector<32x128xf32>, vector<8x128xf32> -> vector<8x128xf32>
    %c0_47 = arith.constant 0 : index
    %c0_48 = arith.constant 0 : index
    %92 = vector.load %arg7[%c0_47, %c0_48] : memref<1x128xf32, #tpu.memory_space<vmem>>, vector<1x128xf32>
    %93 = vector.broadcast %92 : vector<1x128xf32> to vector<8x128xf32>
    %94 = arith.addf %91, %93 : vector<8x128xf32>
    %c0_49 = arith.constant 0 : index
    %c0_50 = arith.constant 0 : index
    %c0_51 = arith.constant 0 : index
    %95 = vector.load %arg9[%c0_49, %c0_50, %c0_51] : memref<1x8x128xf32, #tpu.memory_space<vmem>>, vector<1x8x128xf32>
    %96 = vector.shape_cast %95 : vector<1x8x128xf32> to vector<8x128xf32>
    %97 = vector.shape_cast %94 : vector<8x128xf32> to vector<1x8x128xf32>
    tpu.vector_store %arg9[%c0_49, %c0_50, %c0_51], %97 {strides = array<i32>} : memref<1x8x128xf32, #tpu.memory_space<vmem>>, vector<1x8x128xf32>,
    %98 = tpu.iota {dimensions = array<i32: 1>} : vector<8x128xi32>
    %cst_52 = arith.constant dense<0xFF800000> : vector<8xf32>
    %99 = vector.multi_reduction <maximumf>, %94, %cst_52 [1] : vector<8x128xf32> to vector<8xf32>
    %100 = vector.shape_cast %99 : vector<8xf32> to vector<8x1xf32>
    %101 = vector.broadcast %100 : vector<8x1xf32> to vector<8x128xf32>
    %102 = arith.cmpf oeq, %94, %101 : vector<8x128xf32>
    %c128_i32 = arith.constant 128 : i32
    %103 = vector.broadcast %c128_i32 : i32 to vector<8x128xi32>
    %104 = arith.select %102, %98, %103 : vector<8x128xi1>, vector<8x128xi32>
    %cst_53 = arith.constant dense<2147483647> : vector<8xi32>
    %105 = vector.multi_reduction <minsi>, %104, %cst_53 [1] : vector<8x128xi32> to vector<8xi32>
    %106 = vector.shape_cast %105 : vector<8xi32> to vector<8x1xi32>
    %107 = vector.broadcast %106 : vector<8x1xi32> to vector<8x128xi32>
    %108 = arith.cmpi eq, %98, %107 : vector<8x128xi32>
    %109 = arith.extui %108 : vector<8x128xi1> to vector<8x128xi32>
    %110 = arith.sitofp %109 : vector<8x128xi32> to vector<8x128xf32>
    %c0_54 = arith.constant 0 : index
    %c0_55 = arith.constant 0 : index
    %111 = vector.load %arg8[%c0_54, %c0_55] : memref<128x32xf32, #tpu.memory_space<vmem>>, vector<128x32xf32>
    %cst_56 = arith.constant dense<0.000000e+00> : vector<8x32xf32>
    %112 = tpu.matmul %110, %111, %cst_56 {dimension_numbers = #tpu.dot_dimension_numbers<[1], [0], [0], [1], [0, 0, 1, 1], [], []>} : vector<8x128xf32>, vector<128x32xf32>, vector<8x32xf32> -> vector<8x32xf32>
    %c0_57 = arith.constant 0 : index
    %c0_58 = arith.constant 0 : index
    %113 = vector.load %arg12[%c0_57, %c0_58] : memref<8x32xf32, #tpu.memory_space<vmem>>, vector<8x32xf32>
    tpu.vector_store %arg12[%c0_57, %c0_58], %112 {strides = array<i32>} : memref<8x32xf32, #tpu.memory_space<vmem>>, vector<8x32xf32>,
    return
  }
  func.func @transform_0(%arg0: i32) -> (i32, i32, i32) {
    %c0_i32 = arith.constant 0 : i32
    %c0_i32_0 = arith.constant 0 : i32
    %c0_i32_1 = arith.constant 0 : i32
    %c0_i32_2 = arith.constant 0 : i32
    return %c0_i32, %c0_i32_0, %c0_i32_1 : i32, i32, i32
  }
  func.func @transform_1(%arg0: i32) -> (i32, i32, i32) {
    %c0_i32 = arith.constant 0 : i32
    %c0_i32_0 = arith.constant 0 : i32
    %c0_i32_1 = arith.constant 0 : i32
    %c0_i32_2 = arith.constant 0 : i32
    return %c0_i32, %c0_i32_0, %c0_i32_1 : i32, i32, i32
  }
  func.func @transform_2(%arg0: i32) -> (i32, i32) {
    %c0_i32 = arith.constant 0 : i32
    %c0_i32_0 = arith.constant 0 : i32
    %c0_i32_1 = arith.constant 0 : i32
    return %c0_i32, %c0_i32_0 : i32, i32
  }
  func.func @transform_3(%arg0: i32) -> (i32, i32, i32) {
    %c0_i32 = arith.constant 0 : i32
    %c0_i32_0 = arith.constant 0 : i32
    %c0_i32_1 = arith.constant 0 : i32
    %c0_i32_2 = arith.constant 0 : i32
    return %c0_i32, %c0_i32_0, %c0_i32_1 : i32, i32, i32
  }
  func.func @transform_4(%arg0: i32) -> (i32, i32, i32) {
    %c0_i32 = arith.constant 0 : i32
    %c0_i32_0 = arith.constant 0 : i32
    %c0_i32_1 = arith.constant 0 : i32
    %c0_i32_2 = arith.constant 0 : i32
    return %c0_i32, %c0_i32_0, %c0_i32_1 : i32, i32, i32
  }
  func.func @transform_5(%arg0: i32) -> (i32, i32) {
    %c0_i32 = arith.constant 0 : i32
    %c0_i32_0 = arith.constant 0 : i32
    %c0_i32_1 = arith.constant 0 : i32
    return %c0_i32, %c0_i32_0 : i32, i32
  }
  func.func @transform_6(%arg0: i32) -> (i32, i32) {
    %c0_i32 = arith.constant 0 : i32
    %c0_i32_0 = arith.constant 0 : i32
    %c0_i32_1 = arith.constant 0 : i32
    return %c0_i32, %c0_i32_0 : i32, i32
  }
  func.func @transform_7(%arg0: i32) -> (i32, i32) {
    %c0_i32 = arith.constant 0 : i32
    %c0_i32_0 = arith.constant 0 : i32
    %c0_i32_1 = arith.constant 0 : i32
    return %c0_i32, %c0_i32_0 : i32, i32
  }
  func.func @transform_8(%arg0: i32) -> (i32, i32, i32) {
    %c0_i32 = arith.constant 0 : i32
    %c0_i32_0 = arith.constant 0 : i32
    %c0_i32_1 = arith.constant 0 : i32
    return %arg0, %c0_i32, %c0_i32_0 : i32, i32, i32
  }
}

</mosaic_0001>

<bundles_post_ra>
// kernel: seq2seq_forward.2
= control target key start
LH: loop header
LB: loop body
LE: loop exit
PB: predicated region body
PF: predicated region fallthrough
CT: control target
= control target key end

     0   :  { %s699_s18 = smov 0   ;;  %s873_s0 = inlined_call_operand.vmem [shape: f32[7,8,32], index: 0, kind: input, shape index: {}]   ;;  %s874_s1 = inlined_call_operand.vmem [shape: s32[8,1], index: 1, kind: input, shape index: {}]   ;;  %s875_s2 = inlined_call_operand.vmem [shape: f32[2,64,128], index: 2, kind: input, shape index: {}]   ;;  %s876_s3 = inlined_call_operand.vmem [shape: f32[2,1,128], index: 3, kind: input, shape index: {}]   ;;  %s877_s4 = inlined_call_operand.vmem [shape: f32[2,8,32], index: 4, kind: output, shape index: {0}]   ;;  %s878_s5 = inlined_call_operand.vmem [shape: f32[2,8,32], index: 5, kind: output, shape index: {1}]  }
   0x1 LB: > { %s705_s19 = sadd.s32 4294967295, %s660_s18   ;;  %p542_p0 = scmp.ge.s32.totalorder %s660_s18, 1  ;;  %s660_s18 = sphi %s699_s18, %s16_s18  }
   0x2   : > { %p179_p1 = scmp.lt.s32.totalorder %s660_s18, 8 }
   0x4   : > { %p180_p2 = pnand %p542_p0, %p179_p1 }
   0x5   : > { %p201_p3 = scmp.lt.s32.totalorder (!%p180_p2), %s705_s19, 6  ;;  %p544_p4 = scmp.ne.s32.totalorder (!%p180_p2), %s705_s19, 0 }
   0x6   : > { %183 = sbr.rel (%p180_p2) target bundleno = 1526 (0x5f6), region = 36 }
   0xb   : > { %s202_s20 = scalar_select %p201_p3, %s705_s19, 6 }
   0xc   : > { %208 = sbr.rel (%p544_p4) target bundleno = 20 (0x14), region = 40 }
   0xd   : > { %s543_s21 = sshll.u32 %s202_s20, 3 }
   0xe   : > { %s714_s24 = scalar_lea.vmem %s873_s0, %s543_s21 }
  0x11   : > { %vm209_vm0 = vcmask 261120   ;;  %v662_v0 = vmov 0.0  }
  0x12   : > { %210 = vst.msk [vmem:[%s877_s4] sm:$0xff] %vm209_vm0, %v662_v0  ;;  %211 = vst.msk [vmem:[%s877_s4 + $0x8] sm:$0xff] %vm209_vm0, %v662_v0 }
  0x13   : > { %212 = vst.msk [vmem:[%s878_s5] sm:$0xff] %vm209_vm0, %v662_v0  ;;  %213 = vst.msk [vmem:[%s878_s5 + $0x8] sm:$0xff] %vm209_vm0, %v662_v0 }
  0x14 PF: > { %v227_v2 = vld [vmem:[%s875_s2 + $0x38] sm:$0xff]  ;;  %s663_s12 = smov 32   ;;  %v664_v3 = vmov 0.0   ;;  %v226_v4 = vld [vmem:[%s875_s2 + $0x30] sm:$0xff]  ;;  %vm665_vm1 = vmmov 0   ;;  %v225_v5 = vld [vmem:[%s875_s2 + $0x28] sm:$0xff]  ;;  %v215_v21 = vstv %s705_s19 }
  0x15   : > { %584 = vmatprep.subr.mxu0 %v664_v3  ;;  %600 = vmatprep.mubr.msk.f32.mxu0 %vm665_vm1, %v664_v3  ;;  %v224_v7 = vld [vmem:[%s875_s2 + $0x20] sm:$0xff]  ;;  %v223_v8 = vld [vmem:[%s875_s2 + $0x18] sm:$0xff]  ;;  %v222_v9 = vld [vmem:[%s875_s2 + $0x10] sm:$0xff]  ;;  %vm233_vm2 = vcmask 261120   ;;  %vm241_vm3 = vcmask 523264   ;;  %v666_v15 = vmov 0  }
  0x16   : > { %585 = vmatpush3.msra.mxu0 %v227_v2  ;;  %603 = vmatprep.subr.mxu1 %v664_v3  ;;  %v221_v10 = vld [vmem:[%s875_s2 + $0x8] sm:$0xff]  ;;  %v220_v11 = vld [vmem:[%s875_s2] sm:$0xff]  ;;  %v557_v34 = vld [vmem:[%s875_s2 + $0x78] sm:$0xff]  ;;  %s668_s28 = smov 96  }
  0x17   : > { %586 = vmatprep.subr.mxu0 %v664_v3  ;;  %619 = vmatprep.mubr.msk.f32.mxu1 %vm665_vm1, %v664_v3  ;;  %v217_v12 = vld [vmem:[%s714_s24] sm:$0xff]  ;;  %s667_s24 = smov 64   ;;  %v556_v35 = vld [vmem:[%s875_s2 + $0x70] sm:$0xff]  ;;  %v555_v36 = vld [vmem:[%s875_s2 + $0x68] sm:$0xff] }
  0x18   : > { %587 = vmatpush3.msra.mxu0 %v226_v4  ;;  %637 = vset.pattern.permute.xlu0 %v666_v15  ;;  %v545_v16 = vld [vmem:[%s876_s3] ss:$0 sm:$0xff]  ;;  %v553_v38 = vld [vmem:[%s875_s2 + $0x58] sm:$0xff]  ;;  %v552_v40 = vld [vmem:[%s875_s2 + $0x50] sm:$0xff] }
  0x19   : > { %v732_v1 = vld [vmem:[%s877_s4] sm:$0xff]  ;;  %588 = vmatprep.subr.mxu0 %v664_v3  ;;  %604 = vmatpush3.msra.mxu1 %v557_v34  ;;  %v551_v41 = vld [vmem:[%s875_s2 + $0x48] sm:$0xff] }
  0x1a   : > { %230 = vrot.lane.b32.xlu0 %v732_v1, %s663_s12  ;;  %v219_v6 = vld [vmem:[%s878_s5] sm:$0xff]  ;;  %589 = vmatpush3.msra.mxu0 %v225_v5  ;;  %v548_v42 = vld [vmem:[%s877_s4 + $0x8] sm:$0xff] }
  0x1b   : > { %323 = vrot.lane.b32.xlu1 %v219_v6, %s663_s12  ;;  %590 = vmatprep.subr.mxu0 %v664_v3  ;;  %v214_v20 = vld [vmem:[%s874_s1] sm:$0xff]  ;;  %v549_v44 = vld [vmem:[%s878_s5 + $0x8] sm:$0xff] }
  0x1c   : > { %591 = vmatpush3.msra.mxu0 %v224_v7  ;;  %vm216_vm4 = vcmp.gt.s32.totalorder %v214_v20, %v215_v21  ;;  %605 = vmatprep.subr.mxu1 %v664_v3  ;;  %v554_v37 = vld [vmem:[%s875_s2 + $0x60] sm:$0xff] }
  0x1d   : > { %592 = vmatprep.subr.mxu0 %v664_v3  ;;  %v343_v23 = vsel %vm216_vm4, 1, %v666_v15  ;;  %606 = vmatpush3.msra.mxu1 %v556_v35  ;;  %v550_v43 = vld [vmem:[%s875_s2 + $0x40] sm:$0xff] }
  0x1e   : > { %593 = vmatpush3.msra.mxu0 %v223_v8  ;;  %607 = vmatprep.subr.mxu1 %v664_v3  ;;  %v559_v53 = vld [vmem:[%s876_s3 + $0x1] ss:$0 sm:$0xff] }
  0x1f   : > { %594 = vmatprep.subr.mxu0 %v664_v3  ;;  %608 = vmatpush3.msra.mxu1 %v555_v36 }
  0x20   : > { %595 = vmatpush3.msra.mxu0 %v222_v9  ;;  %609 = vmatprep.subr.mxu1 %v664_v3 }
  0x21   : > { %596 = vmatprep.subr.mxu0 %v664_v3  ;;  %610 = vmatpush3.msra.mxu1 %v554_v37 }
  0x22   : > { %597 = vmatpush3.msra.mxu0 %v221_v10  ;;  %611 = vmatprep.subr.mxu1 %v664_v3 }
  0x23   : > { %598 = vmatprep.subr.mxu0 %v664_v3  ;;  %612 = vmatpush3.msra.mxu1 %v553_v38 }
  0x24   : > { %599 = vmatpush3.msra.mxu0 %v220_v11  ;;  %613 = vmatprep.subr.mxu1 %v664_v3 }
  0x25   : > { %614 = vmatpush3.msra.mxu1 %v552_v40 }
  0x26   : > { %615 = vmatprep.subr.mxu1 %v664_v3 }
  0x27   : > { %616 = vmatpush3.msra.mxu1 %v551_v41 }
  0x28   : > { %617 = vmatprep.subr.mxu1 %v664_v3 }
  0x29   : > { %618 = vmatpush3.msra.mxu1 %v550_v43 }
  0x8c   : > { %v231_v13 = vpop.permute.xlu0 %230 }
  0x8d   : > { %v234_v14 = vsel %vm233_vm2, %v217_v12, %v231_v13  ;;  %v787_v30 = vpop.permute.xlu1 %323 }
  0x8e   : > { %601 = vmatmul.mubr.msk.f32.vlgmr.msra.gmra.mxu0 %vm241_vm3, %v234_v14 }
 0x14e   : > { %v311_v17 = vpop.f32.mrf.mxu0 }
 0x14f   : > { %v312_v18 = vadd.f32 %v545_v16, %v311_v17 }
 0x150   : > { %v602_v19 = vpop.f32.mrf.mxu0 }
 0x151   : > { %638 = vtanh.f32 %v312_v18  ;;  %v547_v24 = vmul.f32 -1.442695, %v312_v18 }
 0x153   : > { %640 = vpow2.f32 %v547_v24 }
 0x15e   : > { %v639_v22 = vpop.eup %638 }
 0x15f   : > { %328 = vrot.lane.b32.xlu0 %v639_v22, %s667_s24 }
 0x160   : > { %v641_v25 = vpop.eup %640 }
 0x161   : > { %v318_v26 = vadd.f32 1.0, %v641_v25 }
 0x163   : > { %345 = vperm.xlu0 %637, %v343_v23   ;;  %642 = vrcp.f32 %v318_v26 }
 0x170   : > { %v643_v27 = vpop.eup %642 }
 0x171   : > { %v326_v31 = vmul.f32 %v643_v27, %v787_v30 }
 0x1d1   : > { %v329_v28 = vpop.permute.xlu0 %328 }
 0x1d2   : > { %v331_v29 = vmul.f32 %v643_v27, %v329_v28 }
 0x1d4   : > { %333 = vrot.lane.b32.xlu1 %v331_v29, %s663_s12 }
 0x1de   : > { %v346_v46 = vpop.permute.xlu0 %345 }
 0x1df   : > { %vm347_vm5 = vcmp.eq.s32.totalorder %v346_v46, 1 }
 0x246   : > { %v334_v32 = vpop.permute.xlu1 %333 }
 0x247   : > { %v790_v33 = vadd.f32 %v334_v32, %v326_v31 }
 0x249   : > { %644 = vtanh.f32 %v790_v33  ;;  %v352_v5 = vsel %vm347_vm5, %v790_v33, %v787_v30 }
 0x256   : > { %v645_v39 = vpop.eup %644 }
 0x257   : > { %339 = vrot.lane.b32.xlu1 %v645_v39, %s667_s24 }
 0x25b   : > { %348 = vrot.lane.b32.xlu1 %v732_v1, %s668_s28 }
 0x25f   : > { %379 = vrot.lane.b32.xlu1 %v548_v42, %s663_s12 }
 0x263   : > { %470 = vrot.lane.b32.xlu1 %v549_v44, %s663_s12 }
 0x2c9   : > { %v340_v45 = vpop.permute.xlu1 %339 }
 0x2ca   : > { %v342_v47 = vmul.f32 %v643_v27, %v340_v45 }
 0x2cd   : > { %v349_v48 = vpop.permute.xlu1 %348 }
 0x2ce   : > { %v351_v49 = vsel %vm347_vm5, %v342_v47, %v349_v48 }
 0x2cf   : > { %354 = vrot.lane.b32.xlu0 %v351_v49, %s663_s12 }
 0x2d1   : > { %v380_v50 = vpop.permute.xlu1 %379 }
 0x2d5   : > { %v471_v0 = vpop.permute.xlu1 %470 }
 0x341   : > { %v355_v51 = vpop.permute.xlu0 %354 }
 0x342   : > { %357 = vst.msk [vmem:[%s877_s4] sm:$0xff] %vm233_vm2, %v355_v51  ;;  %v382_v52 = vsel %vm233_vm2, %v355_v51, %v380_v50 }
 0x343   : > { %620 = vmatmul.mubr.msk.f32.vlgmr.msra.gmra.mxu1 %vm241_vm3, %v382_v52 }
 0x403   : > { %v458_v54 = vpop.f32.mrf.mxu1 }
 0x404   : > { %v459_v55 = vadd.f32 %v559_v53, %v458_v54 }
 0x405   : > { %v621_v56 = vpop.f32.mrf.mxu1 }
 0x406   : > { %646 = vtanh.f32 %v459_v55  ;;  %v561_v58 = vmul.f32 -1.442695, %v459_v55 }
 0x408   : > { %648 = vpow2.f32 %v561_v58 }
 0x413   : > { %v647_v57 = vpop.eup %646 }
 0x414   : > { %475 = vrot.lane.b32.xlu0 %v647_v57, %s667_s24 }
 0x415   : > { %v649_v59 = vpop.eup %648 }
 0x416   : > { %v465_v60 = vadd.f32 1.0, %v649_v59 }
 0x418   : > { %650 = vrcp.f32 %v465_v60 }
 0x425   : > { %v651_v61 = vpop.eup %650 }
 0x426   : > { %v473_v1 = vmul.f32 %v651_v61, %v471_v0 }
 0x486   : > { %v476_v62 = vpop.permute.xlu0 %475 }
 0x487   : > { %v478_v63 = vmul.f32 %v651_v61, %v476_v62 }
 0x489   : > { %480 = vrot.lane.b32.xlu0 %v478_v63, %s663_s12 }
 0x48d   : > { %490 = vrot.lane.b32.xlu0 %v548_v42, %s668_s28 }
 0x4fb   : > { %v481_v2 = vpop.permute.xlu0 %480 }
 0x4fc   : > { %v483_v3 = vadd.f32 %v481_v2, %v473_v1 }
 0x4fe   : > { %652 = vtanh.f32 %v483_v3  ;;  %v494_v6 = vsel %vm347_vm5, %v483_v3, %v471_v0 }
 0x4ff   : > { %v491_v8 = vpop.permute.xlu0 %490 }
 0x50b   : > { %v653_v4 = vpop.eup %652 }
 0x50c   : > { %486 = vrot.lane.b32.xlu1 %v653_v4, %s667_s24 }
 0x510   : > { %359 = vrot.lane.b32.xlu1 %v352_v5, %s668_s28 }
 0x514   : > { %501 = vrot.lane.b32.xlu1 %v494_v6, %s668_s28 }
 0x57e   : > { %v487_v7 = vpop.permute.xlu1 %486 }
 0x57f   : > { %v489_v9 = vmul.f32 %v651_v61, %v487_v7 }
 0x581   : > { %v493_v10 = vsel %vm347_vm5, %v489_v9, %v491_v8 }
 0x582   : > { %496 = vrot.lane.b32.xlu0 %v493_v10, %s663_s12  ;;  %v360_v11 = vpop.permute.xlu1 %359 }
 0x583   : > { %362 = vst.msk [vmem:[%s878_s5] sm:$0xff] %vm233_vm2, %v360_v11 }
 0x586   : > { %v502_v12 = vpop.permute.xlu1 %501 }
 0x587   : > { %563 = vst.msk [vmem:[%s878_s5 + $0x8] sm:$0xff] %vm233_vm2, %v502_v12 }
 0x5f4   : > { %v497_v13 = vpop.permute.xlu0 %496 }
 0x5f5   : > { %562 = vst.msk [vmem:[%s877_s4 + $0x8] sm:$0xff] %vm233_vm2, %v497_v13 }
 0x5f6 PF: > { %s16_s18 = sadd.s32 1, %s660_s18  }
 0x5f7   : > { %p13_p5 = scmp.ge.s32.totalorder %s16_s18, 9  }
 0x5f9   :  { %15 = sbr.rel (!%p13_p5) target bundleno = 1 (0x1), region = 78 }

// kernel: seq2seq_forward.3
= control target key start
LH: loop header
LB: loop body
LE: loop exit
PB: predicated region body
PF: predicated region fallthrough
CT: control target
= control target key end

     0   :  { %s1047_s27 = smov 0   ;;  %s1272_s0 = inlined_call_operand.vmem [shape: f32[2,8,32], index: 0, kind: input, shape index: {}]   ;;  %s1273_s1 = inlined_call_operand.vmem [shape: f32[2,8,32], index: 1, kind: input, shape index: {}]   ;;  %s1274_s2 = inlined_call_operand.vmem [shape: f32[8,32], index: 2, kind: input, shape index: {}]   ;;  %s1275_s3 = inlined_call_operand.vmem [shape: f32[2,64,128], index: 3, kind: input, shape index: {}]   ;;  %s1276_s4 = inlined_call_operand.vmem [shape: f32[2,1,128], index: 4, kind: input, shape index: {}]   ;;  %s1277_s5 = inlined_call_operand.vmem [shape: f32[32,128], index: 5, kind: input, shape index: {}]   ;;  %s1278_s6 = inlined_call_operand.vmem [shape: f32[1,128], index: 6, kind: input, shape index: {}]   ;;  %s1279_s7 = inlined_call_operand.vmem [shape: f32[128,32], index: 7, kind: input, shape index: {}]   ;;  %s1280_s8 = inlined_call_operand.vmem [shape: f32[5,8,128], index: 8, kind: output, shape index: {}]  }
   0x1 LB: > { %s807_s28 = sadd.s32 4294967295, %s994_s27   ;;  %p810_p0 = scmp.ge.s32.totalorder %s994_s27, 1  ;;  %s994_s27 = sphi %s1047_s27, %s18_s27  }
   0x2   : > { %p252_p1 = scmp.lt.s32.totalorder %s994_s27, 6 }
   0x4   : > { %p253_p2 = pnand %p810_p0, %p252_p1 }
   0x5   : > { %p280_p3 = scmp.lt.s32.totalorder (!%p253_p2), %s807_s28, 4  ;;  %p812_p4 = scmp.ne.s32.totalorder (!%p253_p2), %s807_s28, 0 }
   0x6   : > { %256 = sbr.rel (%p253_p2) target bundleno = 2338 (0x922), region = 52 }
   0xb   : > { %s281_s29 = scalar_select %p280_p3, %s807_s28, 4 }
   0xc   : > { %287 = sbr.rel (%p812_p4) target bundleno = 21 (0x15), region = 56 }
   0xd   : > { %s811_s30 = sshll.u32 %s281_s29, 3 }
   0xe   : > { %s1058_s11 = scalar_lea.vmem %s1280_s8, %s811_s30 }
  0x11   : > { %v288_v0 = vld [vmem:[%s1272_s0] sm:$0xff]  ;;  %vm290_vm0 = vcmask 261120   ;;  %v289_v1 = vld [vmem:[%s1272_s0 + $0x8] sm:$0xff] }
  0x12   : > { %v293_v2 = vld [vmem:[%s1273_s1] sm:$0xff]  ;;  %291 = vst.msk [vmem:[#allocation2] sm:$0xff] %vm290_vm0, %v288_v0  ;;  %292 = vst.msk [vmem:[#allocation2 + $0x8] sm:$0xff] %vm290_vm0, %v289_v1  ;;  %v294_v3 = vld [vmem:[%s1273_s1 + $0x8] sm:$0xff] }
  0x13   : > { %295 = vst.msk [vmem:[#allocation3] sm:$0xff] %vm290_vm0, %v293_v2  ;;  %v297_v4 = vld [vmem:[%s1274_s2] sm:$0xff]  ;;  %296 = vst.msk [vmem:[#allocation3 + $0x8] sm:$0xff] %vm290_vm0, %v294_v3 }
  0x14   : > { %298 = vst.msk [vmem:[#allocation4] sm:$0xff] %vm290_vm0, %v297_v4 }
  0x15 PF: > { %v309_v6 = vld [vmem:[%s1275_s3 + $0x38] sm:$0xff]  ;;  %s996_s24 = smov 32   ;;  %v997_v7 = vmov 0.0   ;;  %v308_v8 = vld [vmem:[%s1275_s3 + $0x30] sm:$0xff]  ;;  %vm998_vm1 = vmmov 0   ;;  %v307_v9 = vld [vmem:[%s1275_s3 + $0x28] sm:$0xff] }
  0x16   : > { %874 = vmatprep.subr.mxu0 %v997_v7  ;;  %890 = vmatprep.mubr.msk.f32.mxu0 %vm998_vm1, %v997_v7  ;;  %v306_v11 = vld [vmem:[%s1275_s3 + $0x20] sm:$0xff]  ;;  %v305_v12 = vld [vmem:[%s1275_s3 + $0x18] sm:$0xff]  ;;  %v304_v13 = vld [vmem:[%s1275_s3 + $0x10] sm:$0xff]  ;;  %vm315_vm2 = vcmask 261120   ;;  %vm323_vm3 = vcmask 523264   ;;  %s999_s21 = smov 64  }
  0x17   : > { %875 = vmatpush3.msra.mxu0 %v309_v6  ;;  %923 = vmatprep.subr.mxu1 %v997_v7  ;;  %v303_v14 = vld [vmem:[%s1275_s3 + $0x8] sm:$0xff]  ;;  %v302_v15 = vld [vmem:[%s1275_s3] sm:$0xff]  ;;  %v823_v34 = vld [vmem:[%s1275_s3 + $0x78] sm:$0xff] }
  0x18   : > { %876 = vmatprep.subr.mxu0 %v997_v7  ;;  %955 = vmatprep.mubr.msk.f32.mxu1 %vm998_vm1, %v997_v7  ;;  %v813_v19 = vld [vmem:[%s1276_s4] ss:$0 sm:$0xff]  ;;  %v822_v35 = vld [vmem:[%s1275_s3 + $0x70] sm:$0xff]  ;;  %v821_v36 = vld [vmem:[%s1275_s3 + $0x68] sm:$0xff] }
  0x19   : > { %v300_v5 = vld [vmem:[#allocation2] sm:$0xff]  ;;  %877 = vmatpush3.msra.mxu0 %v308_v8  ;;  %v819_v38 = vld [vmem:[%s1275_s3 + $0x58] sm:$0xff]  ;;  %v818_v39 = vld [vmem:[%s1275_s3 + $0x50] sm:$0xff] }
  0x1a   : > { %312 = vrot.lane.b32.xlu0 %v300_v5, %s996_s24  ;;  %v301_v10 = vld [vmem:[#allocation3] sm:$0xff]  ;;  %878 = vmatprep.subr.mxu0 %v997_v7  ;;  %v820_v37 = vld [vmem:[%s1275_s3 + $0x60] sm:$0xff]  ;;  %v817_v41 = vld [vmem:[%s1275_s3 + $0x48] sm:$0xff] }
  0x1b   : > { %405 = vrot.lane.b32.xlu1 %v301_v10, %s996_s24  ;;  %879 = vmatpush3.msra.mxu0 %v307_v9  ;;  %v299_v16 = vld [vmem:[#allocation4] sm:$0xff]  ;;  %v436_v42 = vld [vmem:[#allocation2 + $0x8] sm:$0xff]  ;;  %v438_v44 = vld [vmem:[#allocation3 + $0x8] sm:$0xff] }
  0x1c   : > { %880 = vmatprep.subr.mxu0 %v997_v7  ;;  %v816_v43 = vld [vmem:[%s1275_s3 + $0x40] sm:$0xff]  ;;  %v575_v1 = vld [vmem:[%s1277_s5 + $0x18] sm:$0xff]  ;;  %v574_v2 = vld [vmem:[%s1277_s5 + $0x10] sm:$0xff] }
  0x1d   : > { %881 = vmatpush3.msra.mxu0 %v306_v11  ;;  %v825_v50 = vld [vmem:[%s1276_s4 + $0x1] ss:$0 sm:$0xff]  ;;  %v573_v3 = vld [vmem:[%s1277_s5 + $0x8] sm:$0xff]  ;;  %v828_v10 = vld [vmem:[%s1278_s6] ss:$0 sm:$0xff] }
  0x1e   : > { %882 = vmatprep.subr.mxu0 %v997_v7  ;;  %v572_v4 = vld [vmem:[%s1277_s5] sm:$0xff] }
  0x1f   : > { %883 = vmatpush3.msra.mxu0 %v305_v12 }
  0x20   : > { %884 = vmatprep.subr.mxu0 %v997_v7 }
  0x21   : > { %885 = vmatpush3.msra.mxu0 %v304_v13 }
  0x22   : > { %886 = vmatprep.subr.mxu0 %v997_v7 }
  0x23   : > { %887 = vmatpush3.msra.mxu0 %v303_v14  ;;  %v656_v14 = vlaneseq }
  0x24   : > { %888 = vmatprep.subr.mxu0 %v997_v7 }
  0x25   : > { %889 = vmatpush3.msra.mxu0 %v302_v15  ;;  %v1196_v15 = vand.u32 127, %v656_v14 }
  0x26   : > { %893 = vmatprep.subr.mxu0 %v997_v7 }
  0x8c   : > { %v313_v17 = vpop.permute.xlu0 %312 }
  0x8d   : > { %v316_v18 = vsel %vm315_vm2, %v299_v16, %v313_v17  ;;  %v406_v30 = vpop.permute.xlu1 %405 }
  0x8e   : > { %891 = vmatmul.mubr.msk.f32.vlgmr.msra.gmra.mxu0 %vm323_vm3, %v316_v18 }
  0x8f   : > { %909 = vmatprep.mubr.msk.f32.mxu0 %vm998_vm1, %v997_v7  ;;  %894 = vmatpush3.msra.mxu0 %v823_v34 }
  0x90   : > { %895 = vmatprep.subr.mxu0 %v997_v7 }
  0x91   : > { %896 = vmatpush3.msra.mxu0 %v822_v35 }
  0x92   : > { %897 = vmatprep.subr.mxu0 %v997_v7 }
  0x93   : > { %898 = vmatpush3.msra.mxu0 %v821_v36 }
  0x94   : > { %899 = vmatprep.subr.mxu0 %v997_v7 }
  0x95   : > { %900 = vmatpush3.msra.mxu0 %v820_v37 }
  0x96   : > { %901 = vmatprep.subr.mxu0 %v997_v7 }
  0x97   : > { %902 = vmatpush3.msra.mxu0 %v819_v38 }
  0x98   : > { %903 = vmatprep.subr.mxu0 %v997_v7 }
  0x99   : > { %904 = vmatpush3.msra.mxu0 %v818_v39  ;;  %v681_v39 = vld [vmem:[%s1279_s7 + $0x10] sm:$0xff] }
  0x9a   : > { %905 = vmatprep.subr.mxu0 %v997_v7 }
  0x9b   : > { %906 = vmatpush3.msra.mxu0 %v817_v41  ;;  %v679_v41 = vld [vmem:[%s1279_s7] sm:$0xff] }
  0x9c   : > { %907 = vmatprep.subr.mxu0 %v997_v7 }
  0x9d   : > { %908 = vmatpush3.msra.mxu0 %v816_v43 }
  0x9e   : > { %912 = vmatprep.subr.mxu0 %v997_v7 }
 0x14e   : > { %v393_v20 = vpop.f32.mrf.mxu0 }
 0x14f   : > { %v394_v21 = vadd.f32 %v813_v19, %v393_v20  ;;  %v694_v20 = vld [vmem:[%s1279_s7 + $0x78] sm:$0xff] }
 0x150   : > { %v892_v22 = vpop.f32.mrf.mxu0  ;;  %924 = vmatpush3.msra.mxu1 %v694_v20 }
 0x151   : > { %972 = vtanh.f32 %v394_v21  ;;  %v815_v24 = vmul.f32 -1.442695, %v394_v21  ;;  %v693_v21 = vld [vmem:[%s1279_s7 + $0x70] sm:$0xff]  ;;  %925 = vmatprep.subr.mxu1 %v997_v7  ;;  %v692_v22 = vld [vmem:[%s1279_s7 + $0x68] sm:$0xff] }
 0x152   : > { %926 = vmatpush3.msra.mxu1 %v693_v21 }
 0x153   : > { %974 = vpow2.f32 %v815_v24  ;;  %927 = vmatprep.subr.mxu1 %v997_v7  ;;  %v690_v24 = vld [vmem:[%s1279_s7 + $0x58] sm:$0xff] }
 0x154   : > { %928 = vmatpush3.msra.mxu1 %v692_v22 }
 0x155   : > { %929 = vmatprep.subr.mxu1 %v997_v7 }
 0x15e   : > { %v973_v23 = vpop.eup %972 }
 0x15f   : > { %410 = vrot.lane.b32.xlu0 %v973_v23, %s999_s21  ;;  %v691_v23 = vld [vmem:[%s1279_s7 + $0x60] sm:$0xff] }
 0x160   : > { %v975_v25 = vpop.eup %974  ;;  %930 = vmatpush3.msra.mxu1 %v691_v23 }
 0x161   : > { %v400_v26 = vadd.f32 1.0, %v975_v25  ;;  %931 = vmatprep.subr.mxu1 %v997_v7  ;;  %v689_v25 = vld [vmem:[%s1279_s7 + $0x50] sm:$0xff] }
 0x162   : > { %932 = vmatpush3.msra.mxu1 %v690_v24 }
 0x163   : > { %976 = vrcp.f32 %v400_v26  ;;  %933 = vmatprep.subr.mxu1 %v997_v7  ;;  %v688_v26 = vld [vmem:[%s1279_s7 + $0x48] sm:$0xff] }
 0x164   : > { %934 = vmatpush3.msra.mxu1 %v689_v25 }
 0x165   : > { %935 = vmatprep.subr.mxu1 %v997_v7 }
 0x166   : > { %936 = vmatpush3.msra.mxu1 %v688_v26 }
 0x167   : > { %937 = vmatprep.subr.mxu1 %v997_v7 }
 0x170   : > { %v977_v27 = vpop.eup %976 }
 0x171   : > { %v408_v31 = vmul.f32 %v977_v27, %v406_v30  ;;  %v684_v30 = vld [vmem:[%s1279_s7 + $0x28] sm:$0xff] }
 0x1d1   : > { %v411_v28 = vpop.permute.xlu0 %410 }
 0x1d2   : > { %v413_v29 = vmul.f32 %v977_v27, %v411_v28  ;;  %v686_v28 = vld [vmem:[%s1279_s7 + $0x38] sm:$0xff] }
 0x1d4   : > { %415 = vrot.lane.b32.xlu1 %v413_v29, %s996_s24  ;;  %v685_v29 = vld [vmem:[%s1279_s7 + $0x30] sm:$0xff] }
 0x246   : > { %v416_v32 = vpop.permute.xlu1 %415 }
 0x247   : > { %v1124_v33 = vadd.f32 %v416_v32, %v408_v31  ;;  %v683_v31 = vld [vmem:[%s1279_s7 + $0x20] sm:$0xff]  ;;  %v682_v32 = vld [vmem:[%s1279_s7 + $0x18] sm:$0xff] }
 0x249   : > { %978 = vtanh.f32 %v1124_v33 }
 0x256   : > { %v979_v40 = vpop.eup %978 }
 0x257   : > { %421 = vrot.lane.b32.xlu0 %v979_v40, %s999_s21  ;;  %v680_v40 = vld [vmem:[%s1279_s7 + $0x8] sm:$0xff] }
 0x25b   : > { %451 = vrot.lane.b32.xlu0 %v436_v42, %s996_s24 }
 0x25f   : > { %542 = vrot.lane.b32.xlu0 %v438_v44, %s996_s24 }
 0x2c9   : > { %v422_v45 = vpop.permute.xlu0 %421 }
 0x2ca   : > { %v424_v46 = vmul.f32 %v977_v27, %v422_v45  ;;  %v687_v27 = vld [vmem:[%s1279_s7 + $0x40] sm:$0xff] }
 0x2cb   : > { %938 = vmatpush3.msra.mxu1 %v687_v27 }
 0x2cc   : > { %426 = vrot.lane.b32.xlu1 %v424_v46, %s996_s24  ;;  %939 = vmatprep.subr.mxu1 %v997_v7 }
 0x2cd   : > { %v452_v47 = vpop.permute.xlu0 %451  ;;  %940 = vmatpush3.msra.mxu1 %v686_v28 }
 0x2ce   : > { %941 = vmatprep.subr.mxu1 %v997_v7 }
 0x2cf   : > { %942 = vmatpush3.msra.mxu1 %v685_v29 }
 0x2d0   : > { %943 = vmatprep.subr.mxu1 %v997_v7 }
 0x2d1   : > { %v543_v61 = vpop.permute.xlu0 %542  ;;  %944 = vmatpush3.msra.mxu1 %v684_v30 }
 0x2d2   : > { %945 = vmatprep.subr.mxu1 %v997_v7 }
 0x2d3   : > { %946 = vmatpush3.msra.mxu1 %v683_v31 }
 0x2d4   : > { %947 = vmatprep.subr.mxu1 %v997_v7 }
 0x2d5   : > { %948 = vmatpush3.msra.mxu1 %v682_v32 }
 0x2d6   : > { %949 = vmatprep.subr.mxu1 %v997_v7 }
 0x2d7   : > { %950 = vmatpush3.msra.mxu1 %v681_v39 }
 0x2d8   : > { %951 = vmatprep.subr.mxu1 %v997_v7 }
 0x2d9   : > { %952 = vmatpush3.msra.mxu1 %v680_v40 }
 0x2da   : > { %953 = vmatprep.subr.mxu1 %v997_v7 }
 0x2db   : > { %954 = vmatpush3.msra.mxu1 %v679_v41 }
 0x33e   : > { %v427_v48 = vpop.permute.xlu1 %426 }
 0x33f   : > { %429 = vst.msk [vmem:[#allocation2] sm:$0xff] %vm315_vm2, %v427_v48  ;;  %v454_v49 = vsel %vm315_vm2, %v427_v48, %v452_v47  ;;  %v1001_v48 = vmov 1.0  }
 0x340   : > { %910 = vmatmul.mubr.msk.f32.vlgmr.msra.gmra.mxu0 %vm323_vm3, %v454_v49 }
 0x341   : > { %920 = vmatprep.mubr.msk.f32.mxu0 %vm998_vm1, %v997_v7  ;;  %913 = vmatpush3.msra.mxu0 %v575_v1 }
 0x342   : > { %914 = vmatprep.subr.mxu0 %v997_v7 }
 0x343   : > { %915 = vmatpush3.msra.mxu0 %v574_v2 }
 0x344   : > { %916 = vmatprep.subr.mxu0 %v997_v7 }
 0x345   : > { %917 = vmatpush3.msra.mxu0 %v573_v3 }
 0x346   : > { %918 = vmatprep.subr.mxu0 %v997_v7 }
 0x347   : > { %919 = vmatpush3.msra.mxu0 %v572_v4 }
 0x400   : > { %v530_v51 = vpop.f32.mrf.mxu0 }
 0x401   : > { %v531_v52 = vadd.f32 %v825_v50, %v530_v51 }
 0x402   : > { %v911_v53 = vpop.f32.mrf.mxu0 }
 0x403   : > { %980 = vtanh.f32 %v531_v52  ;;  %v827_v55 = vmul.f32 -1.442695, %v531_v52 }
 0x405   : > { %982 = vpow2.f32 %v827_v55 }
 0x410   : > { %v981_v54 = vpop.eup %980 }
 0x411   : > { %547 = vrot.lane.b32.xlu1 %v981_v54, %s999_s21 }
 0x412   : > { %v983_v56 = vpop.eup %982 }
 0x413   : > { %v537_v57 = vadd.f32 1.0, %v983_v56 }
 0x415   : > { %984 = vrcp.f32 %v537_v57 }
 0x422   : > { %v985_v58 = vpop.eup %984 }
 0x423   : > { %v545_v62 = vmul.f32 %v985_v58, %v543_v61 }
 0x483   : > { %v548_v59 = vpop.permute.xlu1 %547 }
 0x484   : > { %v550_v60 = vmul.f32 %v985_v58, %v548_v59 }
 0x486   : > { %552 = vrot.lane.b32.xlu1 %v550_v60, %s996_s24 }
 0x4f8   : > { %v553_v63 = vpop.permute.xlu1 %552 }
 0x4f9   : > { %v555_v0 = vadd.f32 %v553_v63, %v545_v62 }
 0x4fb   : > { %986 = vtanh.f32 %v555_v0 }
 0x508   : > { %v987_v5 = vpop.eup %986 }
 0x509   : > { %558 = vrot.lane.b32.xlu0 %v987_v5, %s999_s21 }
 0x57b   : > { %v559_v6 = vpop.permute.xlu0 %558 }
 0x57c   : > { %v561_v8 = vmul.f32 %v985_v58, %v559_v6 }
 0x57e   : > { %563 = vrot.lane.b32.xlu1 %v561_v8, %s996_s24  ;;  %s1000_s24 = smov 96  }
 0x5f0   : > { %v564_v9 = vpop.permute.xlu1 %563 }
 0x5f1   : > { %566 = vst.msk [vmem:[#allocation2 + $0x8] sm:$0xff] %vm315_vm2, %v564_v9  ;;  %921 = vmatmul.mubr.msk.f32.vlgmr.msra.gmra.mxu0 %vm315_vm2, %v564_v9 }
 0x6b1   : > { %v651_v11 = vpop.f32.mrf.mxu0 }
 0x6b2   : > { %v652_v12 = vadd.f32 %v828_v10, %v651_v11 }
 0x6b3   : > { %v922_v13 = vpop.f32.mrf.mxu0 }
 0x6b4   : > { %655 = vst [vmem:[%s1058_s11] sm:$0xff] %v652_v12  ;;  %658 = vmax.xlane.f32.xlu0 %v652_v12 }
 0x73d   : > { %v659_v16 = vpop.xlane.xlu0 %658 }
 0x73e   : > { %vm660_vm4 = vcmp.eq.f32.partialorder %v652_v12, %v659_v16 }
 0x73f   : > { %v661_v17 = vsel %vm660_vm4, %v1196_v15, 128 }
 0x740   : > { %v663_v18 = vshra.s32 %v661_v17, 16  ;;  %v662_v34 = vand.u32 65535, %v661_v17 }
 0x742   : > { %v665_v19 = vcvt.s32.f32 %v663_v18  ;;  %v664_v36 = vcvt.s32.f32 %v662_v34 }
 0x744   : > { %666 = vmin.xlane.f32.xlu1 %v665_v19 }
 0x755   : > { %568 = vrot.lane.b32.xlu1 %v555_v0, %s1000_s24 }
 0x7cd   : > { %v667_v35 = vpop.xlane.xlu1 %666 }
 0x7ce   : > { %vm668_vm5 = vcmp.eq.f32.partialorder %v665_v19, %v667_v35  ;;  %v673_v42 = vcvt.f32.s32 %v667_v35 }
 0x7cf   : > { %v669_v37 = vsel %vm668_vm5, %v664_v36, inf }
 0x7d0   : > { %670 = vmin.xlane.f32.xlu0 %v669_v37  ;;  %v674_v44 = vshll.u32 %v673_v42, 16 }
 0x7d1   : > { %v569_v38 = vpop.permute.xlu1 %568 }
 0x7d2   : > { %571 = vst.msk [vmem:[#allocation3 + $0x8] sm:$0xff] %vm315_vm2, %v569_v38 }
 0x7e6   : > { %431 = vrot.lane.b32.xlu0 %v1124_v33, %s1000_s24 }
 0x859   : > { %v671_v43 = vpop.xlane.xlu0 %670 }
 0x85a   : > { %v672_v45 = vcvt.f32.s32 %v671_v43 }
 0x85c   : > { %v675_v46 = vadd.s32 %v674_v44, %v672_v45 }
 0x85d   : > { %v432_v47 = vpop.permute.xlu0 %431 }
 0x85e   : > { %434 = vst.msk [vmem:[#allocation3] sm:$0xff] %vm315_vm2, %v432_v47  ;;  %vm676_vm6 = vcmp.eq.s32.totalorder %v1196_v15, %v675_v46 }
 0x85f   : > { %956 = vmatmul.mubr.msk.f32.vlgmr.msra.gmra.mxu1 %vm676_vm6, %v1001_v48 }
 0x91f   : > { %v761_v7 = vpop.f32.mrf.mxu1 }
 0x920   : > { %765 = vst.msk [vmem:[#allocation4] sm:$0xff] %vm315_vm2, %v761_v7 }
 0x921   : > { %v957_v49 = vpop.f32.mrf.mxu1 }
 0x922 PF: > { %s18_s27 = sadd.s32 1, %s994_s27  }
 0x923   : > { %p15_p5 = scmp.ge.s32.totalorder %s18_s27, 7  }
 0x925   :  { %17 = sbr.rel (!%p15_p5) target bundleno = 1 (0x1), region = 87 }

</bundles_post_ra>
